<compile_context>
chip_gen: v7x
topology: tpu7x:2x2x1
jax: 0.10.0
libtpu: 0.0.40
codegen_flags: <defaults>
</compile_context>

<pallas_src>
import jax
import jax.numpy as jnp
from jax.experimental import pallas as pl
from jax.experimental.pallas import tpu as pltpu


def _round_up(x: int, m: int) -> int:
    return ((x + m - 1) // m) * m


# ----------------------------------------------------------------------------
# Kernels
# ----------------------------------------------------------------------------
def _linear_bias_relu_kernel(x_ref, w_ref, b_ref, o_ref):
    """Single-K-tile path: one MXU pass + bias + relu, direct store."""
    acc = jnp.dot(
        x_ref[...].astype(jnp.bfloat16),
        w_ref[...],
        preferred_element_type=jnp.float32,
    )
    o_ref[...] = jnp.maximum(acc + b_ref[...], 0.0)


def _linear_bias_relu_kernel_ksplit(x_ref, w_ref, b_ref, o_ref):
    """Multi-K-tile path: accumulate into the resident f32 output block."""
    k = pl.program_id(2)
    partial = jnp.dot(
        x_ref[...].astype(jnp.bfloat16),
        w_ref[...],
        preferred_element_type=jnp.float32,
    )

    @pl.when(k == 0)
    def _():
        o_ref[...] = partial

    @pl.when(k != 0)
    def _():
        o_ref[...] += partial

    @pl.when(k == pl.num_programs(2) - 1)
    def _():
        o_ref[...] = jnp.maximum(o_ref[...] + b_ref[...], 0.0)


# ----------------------------------------------------------------------------
# Wrapper (factory hoists weight prep out of the per-call path)
# ----------------------------------------------------------------------------
def _select_kn_tiles(K: int, N: int):
    """Lane-dense N tile sized to the real N; K tile covering K when it fits."""
    n128 = _round_up(N, 128)
    if n128 >= 512:
        tn = 512
    elif n128 >= 256:
        tn = 256
    else:
        tn = 128
    tk = min(_round_up(K, 128), 2048)
    return tn, tk


def make_interpreter_module_forward(weight, bias):
    """Builds a forward() replaying: flatten -> linear(W, b) -> relu.

    weight: [K, N] float32 (torch Linear weight is [N, K]; stored
            pre-transposed so the kernel does x @ W directly)
    bias:   [N] float32
    Returns: callable(x_nchw [B, C, H, W] f32) -> [B, N] f32
    """
    K, N = weight.shape
    tn, tk = _select_kn_tiles(K, N)
    Kp = _round_up(K, tk)
    Np = _round_up(N, tn)
    n_grid = Np // tn
    k_grid = Kp // tk

    # One-time weight/bias prep (bf16 operands, f32 bias for the VPU epilogue).
    w_p = jnp.pad(weight, ((0, Kp - K), (0, Np - N))).astype(jnp.bfloat16)
    b_p = jnp.pad(bias.astype(jnp.float32), (0, Np - N)).reshape(1, Np)

    def forward(x_nchw):
        B = x_nchw.shape[0]
        K_in = 1
        for d in x_nchw.shape[1:]:
            K_in *= d
        assert K_in == K, "flattened feature dim must match weight rows"

        # bf16 packs 16 rows per vreg -> round the sublane tile to 16.
        tm = 256 if B >= 256 else _round_up(B, 16)
        Mp = _round_up(B, tm)
        m_grid = Mp // tm

        # Graph's `flatten` node: row-major reshape, identical to torch.
        x2d = x_nchw.reshape(B, K)

        # Pre-cast to bf16 only when x is reused across N blocks; otherwise the
        # kernel casts on the fly (saves an un-hidden HBM pass over x).
        if n_grid > 1:
            x2d = x2d.astype(jnp.bfloat16)

        pad_m, pad_k = Mp - B, Kp - K
        if pad_m or pad_k:
            x2d = jnp.pad(x2d, ((0, pad_m), (0, pad_k)))

        if k_grid == 1:
            grid = (m_grid, n_grid)
            kernel = _linear_bias_relu_kernel
            in_specs = [
                pl.BlockSpec((tm, tk), lambda i, j: (i, 0)),   # x tile
                pl.BlockSpec((tk, tn), lambda i, j: (0, j)),   # W tile
                pl.BlockSpec((1, tn), lambda i, j: (0, j)),    # bias tile
            ]
            out_specs = pl.BlockSpec((tm, tn), lambda i, j: (i, j))
            dims = ("parallel", "parallel")
        else:
            grid = (m_grid, n_grid, k_grid)
            kernel = _linear_bias_relu_kernel_ksplit
            in_specs = [
                pl.BlockSpec((tm, tk), lambda i, j, k: (i, k)),
                pl.BlockSpec((tk, tn), lambda i, j, k: (k, j)),
                pl.BlockSpec((1, tn), lambda i, j, k: (0, j)),
            ]
            out_specs = pl.BlockSpec((tm, tn), lambda i, j, k: (i, j))
            dims = ("parallel", "parallel", "arbitrary")

        cost = pl.CostEstimate(
            flops=2 * Mp * Np * Kp,
            transcendentals=0,
            bytes_accessed=(
                Mp * Kp * x2d.dtype.itemsize   # x
                + Kp * Np * 2                  # W (bf16)
                + Np * 4                       # bias
                + Mp * Np * 4                  # output (f32)
            ),
        )

        out_p = pl.pallas_call(
            kernel,
            out_shape=jax.ShapeDtypeStruct((Mp, Np), jnp.float32),
            grid_spec=pltpu.PrefetchScalarGridSpec(
                num_scalar_prefetch=0,
                grid=grid,
                in_specs=in_specs,
                out_specs=out_specs,
            ),
            compiler_params=pltpu.CompilerParams(
                dimension_semantics=dims,
                # Real raise on v5e (16 MiB default); safe on v7x's 64 MiB
                # physical VMEM.  Largest tile working set is ~7 MiB.
                vmem_limit_bytes=32 * 1024 * 1024,
            ),
            cost_estimate=cost,
        )(x2d, w_p, b_p)

        if Mp != B or Np != N:
            out_p = out_p[:B, :N]
        return out_p

    # jit fuses the reshape / edge-pad / slice plumbing around the kernel call.
    return jax.jit(forward)


if __name__ == "__main__":
    # Small shapes consistent with an exported conv-net tail submodule.
    B, C, H, W = 2, 4, 16, 16
    K = C * H * W          # 1024
    N = 32                 # hidden

    key = jax.random.PRNGKey(0)
    kx, kw, kb = jax.random.split(key, 3)

    x = jax.random.normal(kx, (B, C, H, W), dtype=jnp.float32)
    # Deterministic synthetic parameters (not a checkpoint load).
    weight = (jax.random.normal(kw, (K, N), dtype=jnp.float32) / jnp.sqrt(K)).astype(
        jnp.float32
    )
    bias = jax.random.normal(kb, (N,), dtype=jnp.float32) * 0.01

    forward = make_interpreter_module_forward(weight, bias)
    out = forward(x)
    out = jax.block_until_ready(out)
    assert out.shape == (B, N)

    # Reference of the same graph.  bf16-operand reference matches the kernel's
    # operand precision; f32 reference gets a loosened tolerance to absorb the
    # bf16 rounding of the matmul operands.
    x2d = x.reshape(B, K)
    ref_bf16 = jnp.maximum(
        jnp.dot(
            x2d.astype(jnp.bfloat16),
            weight.astype(jnp.bfloat16),
            preferred_element_type=jnp.float32,
        )
        + bias,
        0.0,
    )
    ref_f32 = jnp.maximum(x2d @ weight + bias, 0.0)

    assert jnp.allclose(out, ref_bf16, atol=1e-3, rtol=1e-3), "mismatch vs bf16 ref"
    assert jnp.allclose(out, ref_f32, atol=5e-2, rtol=5e-2), "mismatch vs f32 ref"

    print("KERNEL_OK")
</pallas_src>

<mosaic_0001>
module attributes {stable_mosaic.version = 11 : i64} {
  func.func @_linear_bias_relu_kernel(%arg0: i32, %arg1: i32, %arg2: memref<16x1024xf32, #tpu.memory_space<vmem>>, %arg3: memref<1024x128xbf16, #tpu.memory_space<vmem>>, %arg4: memref<1x128xf32, #tpu.memory_space<vmem>>, %arg5: memref<16x128xf32, #tpu.memory_space<vmem>>) attributes {dimension_semantics = [#tpu.dimension_semantics<parallel>, #tpu.dimension_semantics<parallel>], iteration_bounds = array<i64: 1, 1>, scalar_prefetch = 0 : i64, scratch_operands = 0 : i64, tpu.core_type = #tpu.core_type<tc>, window_params = [{transform_indices = @transform_0, window_bounds = array<i64: 16, 1024>}, {transform_indices = @transform_1, window_bounds = array<i64: 1024, 128>}, {transform_indices = @transform_2, window_bounds = array<i64: 1, 128>}, {transform_indices = @transform_3, window_bounds = array<i64: 16, 128>}]} {
    %c0 = arith.constant 0 : index
    %c0_0 = arith.constant 0 : index
    %0 = vector.load %arg2[%c0, %c0_0] : memref<16x1024xf32, #tpu.memory_space<vmem>>, vector<16x1024xf32>
    %1 = arith.truncf %0 : vector<16x1024xf32> to vector<16x1024xbf16>
    %c0_1 = arith.constant 0 : index
    %c0_2 = arith.constant 0 : index
    %2 = vector.load %arg3[%c0_1, %c0_2] : memref<1024x128xbf16, #tpu.memory_space<vmem>>, vector<1024x128xbf16>
    %cst = arith.constant dense<0.000000e+00> : vector<16x128xf32>
    %3 = tpu.matmul %1, %2, %cst {dimension_numbers = #tpu.dot_dimension_numbers<[1], [0], [0], [1], [0, 0, 1, 1], [], []>} : vector<16x1024xbf16>, vector<1024x128xbf16>, vector<16x128xf32> -> vector<16x128xf32>
    %c0_3 = arith.constant 0 : index
    %c0_4 = arith.constant 0 : index
    %4 = vector.load %arg4[%c0_3, %c0_4] : memref<1x128xf32, #tpu.memory_space<vmem>>, vector<1x128xf32>
    %5 = vector.broadcast %4 : vector<1x128xf32> to vector<16x128xf32>
    %6 = arith.addf %3, %5 : vector<16x128xf32>
    %cst_5 = arith.constant 0.000000e+00 : f32
    %7 = vector.broadcast %cst_5 : f32 to vector<16x128xf32>
    %8 = arith.maximumf %6, %7 : vector<16x128xf32>
    %c0_6 = arith.constant 0 : index
    %c0_7 = arith.constant 0 : index
    %9 = vector.load %arg5[%c0_6, %c0_7] : memref<16x128xf32, #tpu.memory_space<vmem>>, vector<16x128xf32>
    tpu.vector_store %arg5[%c0_6, %c0_7], %8 {strides = array<i32>} : memref<16x128xf32, #tpu.memory_space<vmem>>, vector<16x128xf32>,
    return
  }
  func.func @transform_0(%arg0: i32, %arg1: i32) -> (i32, i32) {
    %c0_i32 = arith.constant 0 : i32
    %c0_i32_0 = arith.constant 0 : i32
    return %arg0, %c0_i32 : i32, i32
  }
  func.func @transform_1(%arg0: i32, %arg1: i32) -> (i32, i32) {
    %c0_i32 = arith.constant 0 : i32
    %c0_i32_0 = arith.constant 0 : i32
    return %c0_i32, %arg1 : i32, i32
  }
  func.func @transform_2(%arg0: i32, %arg1: i32) -> (i32, i32) {
    %c0_i32 = arith.constant 0 : i32
    %c0_i32_0 = arith.constant 0 : i32
    return %c0_i32, %arg1 : i32, i32
  }
  func.func @transform_3(%arg0: i32, %arg1: i32) -> (i32, i32) {
    %c0_i32 = arith.constant 0 : i32
    return %arg0, %arg1 : i32, i32
  }
}

</mosaic_0001>

<bundles_post_ra>
// kernel: forward.1
= control target key start
LH: loop header
LB: loop body
LE: loop exit
PB: predicated region body
PF: predicated region fallthrough
CT: control target
= control target key end

     0   :  { %8 = vsyncpa [#allocation3], 0  ;;  %s989_s12 = smov [#allocation2]   ;;  %s1081_s0 = inlined_call_operand.vmem [shape: f32[16,1024], index: 0, kind: input, shape index: {}]   ;;  %s1082_s1 = inlined_call_operand.hbm [shape: bf16[1024,128], index: 1, kind: input, shape index: {}]   ;;  %s1083_s2 = inlined_call_operand.vmem [shape: f32[1,128], index: 2, kind: input, shape index: {}]   ;;  %s1084_s3 = inlined_call_operand.vmem [shape: f32[16,128], index: 3, kind: output, shape index: {}]  }
   0x1   :  { %s16_s13 = sshll.u32 %s989_s12, 4  ;;  %s965_s16 = scalar_lea.hbm %s1082_s1, 8192  ;;  %s17_s13 = int_to_ptr.vmem [resolvable:$true] %s16_s13 }
   0x2   :  { %p966_p0 = scmp.ne.s32.totalorder %s1082_s1, %s965_s16  ;;  %p969_p1 = scmp.lt.u32.totalorder %s965_s16, %s1082_s1 }
   0x4   :  { %p971_p2 = pnand %p969_p1, %p966_p0 }
   0x6   :  { %974 = shalt.err (!%p971_p2)
}
   0x7   :  { %s975_s21 = scalar_lea.vmem %s17_s13, 8192  ;;  %p980_p4 = scmp.lt.s32.totalorder %s17_s13, %s17_s13 }
   0x8   :  { %p976_p3 = scmp.ne.s32.totalorder %s17_s13, %s975_s21  ;;  %p981_p5 = scmp.lt.s32.totalorder %s975_s21, %s975_s21 }
   0xa   :  { %p982_p6 = por %p981_p5, %p980_p4 }
   0xc   :  { %p983_p7 = pnand %p982_p6, %p976_p3 }
   0xe   :  { %986 = shalt.err (!%p983_p7)
}
   0xf   :  { %s990_s22 = smov 64   ;;  %s991_s23 = smov 4  }
  0x10   :  { %22 = dma.hbm_to_vmem [thread:$0]  %s1082_s1, 8192, %s17_s13, [#allocation3], %s990_s22, %s990_s22, %s991_s23  }
  0x11   :  { %987 = dma.done.wait [#allocation3], 8192  }
  0x12   :  { %988 = vsyncadd [#allocation3], 4294959104  ;;  %v901_v0 = vld [vmem:[#allocation2 + $0x40] sm:$0xff]   ;;  %v905_v4 = vld [vmem:[#allocation2 + $0x48] sm:$0xff]  }
  0x13   :  { %v902_v1 = vld [vmem:[#allocation2 + $0xc0] sm:$0xff]   ;;  %810 = vmatprep.subr.bf16.mxu0 %v901_v0  ;;  %v906_v5 = vld [vmem:[#allocation2 + $0xc8] sm:$0xff]   ;;  %v909_v8 = vld [vmem:[#allocation2 + $0x50] sm:$0xff]  }
  0x14   :  { %v903_v2 = vld [vmem:[#allocation2] sm:$0xff]   ;;  %832 = vmatprep.subr.bf16.mxu1 %v902_v1  ;;  %v907_v6 = vld [vmem:[#allocation2 + $0x8] sm:$0xff]   ;;  %v910_v9 = vld [vmem:[#allocation2 + $0xd0] sm:$0xff]  }
  0x15   :  { %v904_v3 = vld [vmem:[#allocation2 + $0x80] sm:$0xff]   ;;  %811 = vmatpush3.bf16.msra.mxu0 %v903_v2  ;;  %v908_v7 = vld [vmem:[#allocation2 + $0x88] sm:$0xff]   ;;  %v911_v10 = vld [vmem:[#allocation2 + $0x10] sm:$0xff]  }
  0x16   :  { %833 = vmatpush3.bf16.msra.mxu1 %v904_v3  ;;  %812 = vmatprep.subr.bf16.mxu0 %v905_v4  ;;  %v912_v11 = vld [vmem:[#allocation2 + $0x90] sm:$0xff]   ;;  %v913_v12 = vld [vmem:[#allocation2 + $0x58] sm:$0xff]   ;;  %v917_v16 = vld [vmem:[#allocation2 + $0x60] sm:$0xff]  }
  0x17   :  { %834 = vmatprep.subr.bf16.mxu1 %v906_v5  ;;  %v914_v13 = vld [vmem:[#allocation2 + $0xd8] sm:$0xff]   ;;  %v918_v17 = vld [vmem:[#allocation2 + $0xe0] sm:$0xff]   ;;  %v921_v20 = vld [vmem:[#allocation2 + $0x68] sm:$0xff]  }
  0x18   :  { %v915_v14 = vld [vmem:[#allocation2 + $0x18] sm:$0xff]   ;;  %v919_v18 = vld [vmem:[#allocation2 + $0x20] sm:$0xff]   ;;  %v922_v21 = vld [vmem:[#allocation2 + $0xe8] sm:$0xff]  }
  0x19   :  { %813 = vmatpush3.bf16.msra.mxu0 %v907_v6  ;;  %v916_v15 = vld [vmem:[#allocation2 + $0x98] sm:$0xff]   ;;  %v920_v19 = vld [vmem:[#allocation2 + $0xa0] sm:$0xff]   ;;  %v923_v22 = vld [vmem:[#allocation2 + $0x28] sm:$0xff]  }
  0x1a   :  { %835 = vmatpush3.bf16.msra.mxu1 %v908_v7  ;;  %814 = vmatprep.subr.bf16.mxu0 %v909_v8  ;;  %v924_v23 = vld [vmem:[#allocation2 + $0xa8] sm:$0xff]   ;;  %v925_v24 = vld [vmem:[#allocation2 + $0x70] sm:$0xff]   ;;  %v929_v28 = vld [vmem:[#allocation2 + $0x78] sm:$0xff]  }
  0x1b   :  { %836 = vmatprep.subr.bf16.mxu1 %v910_v9  ;;  %v926_v25 = vld [vmem:[#allocation2 + $0xf0] sm:$0xff]   ;;  %v930_v29 = vld [vmem:[#allocation2 + $0xf8] sm:$0xff]   ;;  %v30_v32 = vld [vmem:[%s1081_s0 + $0x8] sm:$0xff] }
  0x1c   :  { %v927_v26 = vld [vmem:[#allocation2 + $0x30] sm:$0xff]   ;;  %v931_v30 = vld [vmem:[#allocation2 + $0x38] sm:$0xff]   ;;  %v38_v33 = vld [vmem:[%s1081_s0 + $0x48] sm:$0xff] }
  0x1d   :  { %815 = vmatpush3.bf16.msra.mxu0 %v911_v10  ;;  %v928_v27 = vld [vmem:[#allocation2 + $0xb0] sm:$0xff]   ;;  %v932_v31 = vld [vmem:[#allocation2 + $0xb8] sm:$0xff]   ;;  %v46_v35 = vpack.c.bf16 %v38_v33, %v30_v32  ;;  %v29_v37 = vld [vmem:[%s1081_s0] sm:$0xff] }
  0x1e   :  { %837 = vmatpush3.bf16.msra.mxu1 %v912_v11  ;;  %816 = vmatprep.subr.bf16.mxu0 %v913_v12  ;;  %v32_v34 = vld [vmem:[%s1081_s0 + $0x18] sm:$0xff]  ;;  %v37_v38 = vld [vmem:[%s1081_s0 + $0x40] sm:$0xff]  ;;  %v31_v41 = vld [vmem:[%s1081_s0 + $0x10] sm:$0xff] }
  0x1f   :  { %838 = vmatprep.subr.bf16.mxu1 %v914_v13  ;;  %v40_v36 = vld [vmem:[%s1081_s0 + $0x58] sm:$0xff]  ;;  %v45_v40 = vpack.c.bf16 %v37_v38, %v29_v37  ;;  %v39_v42 = vld [vmem:[%s1081_s0 + $0x50] sm:$0xff]  ;;  %604 = vmatprep.mubr.bf16.mxu0 %v46_v35  ;;  %v933_v44 = vld [vmem:[#allocation2 + $0x140] sm:$0xff]  }
  0x20   :  { %v48_v39 = vpack.c.bf16 %v40_v36, %v32_v34  ;;  %v47_v43 = vpack.c.bf16 %v39_v42, %v31_v41  ;;  %v934_v45 = vld [vmem:[#allocation2 + $0x1c0] sm:$0xff]   ;;  %v937_v48 = vld [vmem:[#allocation2 + $0x148] sm:$0xff]   ;;  %v941_v52 = vld [vmem:[#allocation2 + $0x150] sm:$0xff]  }
  0x21   :  { %817 = vmatpush3.bf16.msra.mxu0 %v915_v14  ;;  %v935_v46 = vld [vmem:[#allocation2 + $0x100] sm:$0xff]   ;;  %v938_v49 = vld [vmem:[#allocation2 + $0x1c8] sm:$0xff]   ;;  %v942_v53 = vld [vmem:[#allocation2 + $0x1d0] sm:$0xff]  }
  0x22   :  { %839 = vmatpush3.bf16.msra.mxu1 %v916_v15  ;;  %818 = vmatprep.subr.bf16.mxu0 %v917_v16  ;;  %v936_v47 = vld [vmem:[#allocation2 + $0x180] sm:$0xff]   ;;  %v939_v50 = vld [vmem:[#allocation2 + $0x108] sm:$0xff]   ;;  %v943_v54 = vld [vmem:[#allocation2 + $0x110] sm:$0xff]  }
  0x23   :  { %840 = vmatprep.subr.bf16.mxu1 %v918_v17  ;;  %645 = vmatprep.mubr.bf16.mxu1 %v48_v39  ;;  %v940_v51 = vld [vmem:[#allocation2 + $0x188] sm:$0xff]   ;;  %v944_v55 = vld [vmem:[#allocation2 + $0x190] sm:$0xff]   ;;  %v945_v56 = vld [vmem:[#allocation2 + $0x158] sm:$0xff]  }
  0x24   :  { %v946_v57 = vld [vmem:[#allocation2 + $0x1d8] sm:$0xff]   ;;  %v949_v60 = vld [vmem:[#allocation2 + $0x160] sm:$0xff]   ;;  %v953_v0 = vld [vmem:[#allocation2 + $0x168] sm:$0xff]  }
  0x25   :  { %819 = vmatpush3.bf16.msra.mxu0 %v919_v18  ;;  %v947_v58 = vld [vmem:[#allocation2 + $0x118] sm:$0xff]   ;;  %v950_v61 = vld [vmem:[#allocation2 + $0x1e0] sm:$0xff]   ;;  %v954_v1 = vld [vmem:[#allocation2 + $0x1e8] sm:$0xff]  }
  0x26   :  { %841 = vmatpush3.bf16.msra.mxu1 %v920_v19  ;;  %820 = vmatprep.subr.bf16.mxu0 %v921_v20  ;;  %v948_v59 = vld [vmem:[#allocation2 + $0x198] sm:$0xff]   ;;  %v951_v62 = vld [vmem:[#allocation2 + $0x120] sm:$0xff]   ;;  %v955_v2 = vld [vmem:[#allocation2 + $0x128] sm:$0xff]  }
  0x27   :  { %842 = vmatprep.subr.bf16.mxu1 %v922_v21  ;;  %v952_v63 = vld [vmem:[#allocation2 + $0x1a0] sm:$0xff]   ;;  %v956_v3 = vld [vmem:[#allocation2 + $0x1a8] sm:$0xff]   ;;  %v957_v4 = vld [vmem:[#allocation2 + $0x170] sm:$0xff]  }
  0x28   :  { %v958_v5 = vld [vmem:[#allocation2 + $0x1f0] sm:$0xff]   ;;  %v961_v8 = vld [vmem:[#allocation2 + $0x178] sm:$0xff]   ;;  %v34_v12 = vld [vmem:[%s1081_s0 + $0x28] sm:$0xff] }
  0x29   :  { %821 = vmatpush3.bf16.msra.mxu0 %v923_v22  ;;  %v959_v6 = vld [vmem:[#allocation2 + $0x130] sm:$0xff]   ;;  %v962_v9 = vld [vmem:[#allocation2 + $0x1f8] sm:$0xff]   ;;  %v42_v13 = vld [vmem:[%s1081_s0 + $0x68] sm:$0xff] }
  0x2a   :  { %843 = vmatpush3.bf16.msra.mxu1 %v924_v23  ;;  %822 = vmatprep.subr.bf16.mxu0 %v925_v24  ;;  %v960_v7 = vld [vmem:[#allocation2 + $0x1b0] sm:$0xff]   ;;  %v963_v10 = vld [vmem:[#allocation2 + $0x138] sm:$0xff]   ;;  %v50_v16 = vpack.c.bf16 %v42_v13, %v34_v12  ;;  %v33_v18 = vld [vmem:[%s1081_s0 + $0x20] sm:$0xff] }
  0x2b   :  { %844 = vmatprep.subr.bf16.mxu1 %v926_v25  ;;  %v964_v11 = vld [vmem:[#allocation2 + $0x1b8] sm:$0xff]   ;;  %v41_v19 = vld [vmem:[%s1081_s0 + $0x60] sm:$0xff]  ;;  %v35_v20 = vld [vmem:[%s1081_s0 + $0x30] sm:$0xff] }
  0x2c   :  { %v36_v14 = vld [vmem:[%s1081_s0 + $0x38] sm:$0xff]  ;;  %v49_v21 = vpack.c.bf16 %v41_v19, %v33_v18  ;;  %v43_v22 = vld [vmem:[%s1081_s0 + $0x70] sm:$0xff] }
  0x2d   :  { %823 = vmatpush3.bf16.msra.mxu0 %v927_v26  ;;  %v44_v15 = vld [vmem:[%s1081_s0 + $0x78] sm:$0xff]  ;;  %v51_v23 = vpack.c.bf16 %v43_v22, %v35_v20  ;;  %v745_v26 = vld [vmem:[%s1083_s2] ss:$0 sm:$0xff] }
  0x2e   :  { %845 = vmatpush3.bf16.msra.mxu1 %v928_v27  ;;  %824 = vmatprep.subr.bf16.mxu0 %v929_v28  ;;  %v52_v17 = vpack.c.bf16 %v44_v15, %v36_v14 }
  0x2f   :  { %846 = vmatprep.subr.bf16.mxu1 %v930_v29 }
  0x31   :  { %825 = vmatpush3.bf16.msra.mxu0 %v931_v30 }
  0x32   :  { %847 = vmatpush3.bf16.msra.mxu1 %v932_v31  ;;  %854 = vmatprep.subr.bf16.mxu0 %v933_v44 }
  0x33   :  { %876 = vmatprep.subr.bf16.mxu1 %v934_v45 }
  0x34   :  { %605 = vmatmul.mubr.bf16.vlgmr.msra.gmra.mrb[0].mxu0 %v45_v40 }
  0x35   :  { %646 = vmatmul.mubr.bf16.vlgmr.msra.gmra.mrb[0].mxu1 %v47_v43  ;;  %855 = vmatpush3.bf16.msra.mxu0 %v935_v46 }
  0x36   :  { %877 = vmatpush3.bf16.msra.mxu1 %v936_v47  ;;  %856 = vmatprep.subr.bf16.mxu0 %v937_v48 }
  0x37   :  { %878 = vmatprep.subr.bf16.mxu1 %v938_v49  ;;  %686 = vmatprep.mubr.bf16.mxu0 %v50_v16 }
  0x38   :  { %727 = vmatprep.mubr.bf16.mxu1 %v52_v17 }
  0x39   :  { %857 = vmatpush3.bf16.msra.mxu0 %v939_v50 }
  0x3a   :  { %879 = vmatpush3.bf16.msra.mxu1 %v940_v51  ;;  %858 = vmatprep.subr.bf16.mxu0 %v941_v52 }
  0x3b   :  { %880 = vmatprep.subr.bf16.mxu1 %v942_v53 }
  0x3d   :  { %859 = vmatpush3.bf16.msra.mxu0 %v943_v54 }
  0x3e   :  { %881 = vmatpush3.bf16.msra.mxu1 %v944_v55  ;;  %860 = vmatprep.subr.bf16.mxu0 %v945_v56 }
  0x3f   :  { %882 = vmatprep.subr.bf16.mxu1 %v946_v57 }
  0x41   :  { %861 = vmatpush3.bf16.msra.mxu0 %v947_v58 }
  0x42   :  { %883 = vmatpush3.bf16.msra.mxu1 %v948_v59  ;;  %862 = vmatprep.subr.bf16.mxu0 %v949_v60 }
  0x43   :  { %884 = vmatprep.subr.bf16.mxu1 %v950_v61 }
  0x45   :  { %863 = vmatpush3.bf16.msra.mxu0 %v951_v62 }
  0x46   :  { %885 = vmatpush3.bf16.msra.mxu1 %v952_v63  ;;  %864 = vmatprep.subr.bf16.mxu0 %v953_v0 }
  0x47   :  { %886 = vmatprep.subr.bf16.mxu1 %v954_v1 }
  0x49   :  { %865 = vmatpush3.bf16.msra.mxu0 %v955_v2 }
  0x4a   :  { %887 = vmatpush3.bf16.msra.mxu1 %v956_v3  ;;  %866 = vmatprep.subr.bf16.mxu0 %v957_v4 }
  0x4b   :  { %888 = vmatprep.subr.bf16.mxu1 %v958_v5 }
  0x4d   :  { %867 = vmatpush3.bf16.msra.mxu0 %v959_v6 }
  0x4e   :  { %889 = vmatpush3.bf16.msra.mxu1 %v960_v7  ;;  %868 = vmatprep.subr.bf16.mxu0 %v961_v8 }
  0x4f   :  { %890 = vmatprep.subr.bf16.mxu1 %v962_v9 }
  0x51   :  { %869 = vmatpush3.bf16.msra.mxu0 %v963_v10 }
  0x52   :  { %891 = vmatpush3.bf16.msra.mxu1 %v964_v11 }
  0x54   :  { %687 = vmatmul.mubr.bf16.vlgmr.msra.gmra.mrb[4].mxu0 %v49_v21 }
  0x55   :  { %728 = vmatmul.mubr.bf16.vlgmr.msra.gmra.mrb[4].mxu1 %v51_v23 }
 0x107   :  { %v826_v24 = vpop.f32.mrb[0].mxu0 }
 0x108   :  { %v848_v25 = vpop.f32.mrb[0].mxu1  ;;  %v827_v27 = vpop.f32.mrb[1].mxu0 }
 0x109   :  { %v828_v28 = vadd.f32 %v827_v27, %v826_v24  ;;  %v849_v29 = vpop.f32.mrb[1].mxu1  ;;  %v829_v30 = vpop.f32.mrb[2].mxu0 }
 0x10a   :  { %v850_v31 = vadd.f32 %v849_v29, %v848_v25  ;;  %v851_v32 = vpop.f32.mrb[2].mxu1  ;;  %v830_v33 = vpop.f32.mrb[3].mxu0 }
 0x10b   :  { %v607_v34 = vadd.f32 %v828_v28, %v745_v26  ;;  %v831_v35 = vadd.f32 %v830_v33, %v829_v30  ;;  %v852_v36 = vpop.f32.mrb[3].mxu1 }
 0x10c   :  { %v853_v37 = vadd.f32 %v852_v36, %v851_v32 }
 0x10d   :  { %v648_v38 = vadd.f32 %v850_v31, %v607_v34  ;;  %v610_v39 = vadd.f32 %v831_v35, %v745_v26 }
 0x10f   :  { %v651_v40 = vadd.f32 %v853_v37, %v610_v39 }
 0x127   :  { %v870_v41 = vpop.f32.mrb[4].mxu0 }
 0x128   :  { %v892_v42 = vpop.f32.mrb[4].mxu1  ;;  %v871_v43 = vpop.f32.mrb[5].mxu0 }
 0x129   :  { %v872_v44 = vadd.f32 %v871_v43, %v870_v41  ;;  %v893_v45 = vpop.f32.mrb[5].mxu1  ;;  %v873_v46 = vpop.f32.mrb[6].mxu0 }
 0x12a   :  { %v894_v47 = vadd.f32 %v893_v45, %v892_v42  ;;  %v895_v48 = vpop.f32.mrb[6].mxu1  ;;  %v874_v49 = vpop.f32.mrb[7].mxu0 }
 0x12b   :  { %v689_v50 = vadd.f32 %v872_v44, %v648_v38  ;;  %v875_v51 = vadd.f32 %v874_v49, %v873_v46  ;;  %v896_v52 = vpop.f32.mrb[7].mxu1 }
 0x12c   :  { %v897_v53 = vadd.f32 %v896_v52, %v895_v48 }
 0x12d   :  { %v730_v54 = vadd.f32 %v894_v47, %v689_v50  ;;  %v692_v55 = vadd.f32 %v875_v51, %v651_v40 }
 0x12f   :  { %v736_v56 = vmax.f32 %v730_v54, 0.0  ;;  %v733_v57 = vadd.f32 %v897_v53, %v692_v55 }
 0x131   :  { %738 = vst [vmem:[%s1084_s3] sm:$0xff] %v736_v56  ;;  %v737_v58 = vmax.f32 %v733_v57, 0.0 }
 0x133   :  { %739 = vst [vmem:[%s1084_s3 + $0x8] sm:$0xff] %v737_v58 }
 0x134   :  { %744 = vsyncpa [#allocation3], 1 }

</bundles_post_ra>
